<compile_context>
chip_gen: v7x
topology: tpu7x:2x2x1
jax: 0.10.0
libtpu: 0.0.40
codegen_flags: <defaults>
</compile_context>

<pallas_src>
import functools

import jax
import jax.numpy as jnp
from jax.experimental import pallas as pl
from jax.experimental.pallas import tpu as pltpu


def _round_up(v, m):
    return ((v + m - 1) // m) * m


def _fc_relu_kernel_single_k(x_ref, w_ref, b_ref, o_ref):
    """Whole K resident: one MXU pass, fused f32 bias + ReLU epilogue."""
    y = jnp.dot(x_ref[...], w_ref[...], preferred_element_type=jnp.float32)
    o_ref[...] = jnp.maximum(y + b_ref[...], 0.0).astype(o_ref.dtype)


def _fc_relu_kernel_multi_k(x_ref, w_ref, b_ref, o_ref, acc_ref):
    """Large-K path: reduce over the last grid axis into an f32 accumulator."""
    k = pl.program_id(2)

    @pl.when(k == 0)
    def _():
        acc_ref[...] = jnp.zeros_like(acc_ref)

    acc_ref[...] += jnp.dot(
        x_ref[...], w_ref[...], preferred_element_type=jnp.float32
    )

    @pl.when(k == pl.num_programs(2) - 1)
    def _():
        # Bias added exactly once per (i, j) tile, then ReLU (activ='relu');
        # norm='none' -> identity.
        o_ref[...] = jnp.maximum(acc_ref[...] + b_ref[...], 0.0).astype(o_ref.dtype)


@functools.partial(jax.jit, static_argnames=("tm", "tn", "tk", "compute_dtype"))
def fully_connected_block(x, weight, bias, *, tm=256, tn=512, tk=512,
                          compute_dtype=jnp.bfloat16):
    """relu(x @ weight.T + bias) via a Pallas TPU kernel.

    x      : (..., K) activations (arbitrary leading dims, like nn.Linear)
    weight : (N, K)   nn.Linear weight (PyTorch layout)
    bias   : (N,)     nn.Linear bias
    """
    orig_shape = x.shape
    K = orig_shape[-1]
    N, K2 = weight.shape
    assert K == K2 and bias.shape == (N,)

    out_dtype = x.dtype
    x2 = x.reshape(-1, K)
    M = x2.shape[0]

    # ---- tile selection (alignment + VMEM aware, lane-dense output) --------
    # Second-minor block dims are multiples of 8, minor block dims multiples
    # of 128 (vreg tiling). Tiles are clamped to the padded array extents.
    tm = min(tm, _round_up(M, 8))
    tn = min(tn, _round_up(N, 128))
    tk = min(tk, _round_up(K, 128))
    # Pad every dim to an exact tile multiple so no grid step sees a partial
    # block. Zero padding is exact: extra K terms add 0 to the dot, padded N
    # columns give relu(0 + 0) = 0 and are sliced off below.
    Mp, Np, Kp = _round_up(M, tm), _round_up(N, tn), _round_up(K, tk)

    xp = jnp.zeros((Mp, Kp), compute_dtype).at[:M, :K].set(x2.astype(compute_dtype))
    wtp = jnp.zeros((Kp, Np), compute_dtype).at[:K, :N].set(
        weight.T.astype(compute_dtype))
    bp = jnp.zeros((1, Np), jnp.float32).at[0, :N].set(bias.astype(jnp.float32))

    grid_m, grid_n, grid_k = Mp // tm, Np // tn, Kp // tk

    if grid_k == 1:
        # K fits in one block: no reduction axis, no accumulator, no pl.when.
        grid_spec = pltpu.PrefetchScalarGridSpec(
            num_scalar_prefetch=0,
            grid=(grid_m, grid_n),
            in_specs=[
                pl.BlockSpec((tm, Kp), lambda i, j: (i, 0)),   # x tile
                pl.BlockSpec((Kp, tn), lambda i, j: (0, j)),   # W^T tile
                pl.BlockSpec((1, tn), lambda i, j: (0, j)),    # bias tile
            ],
            out_specs=pl.BlockSpec((tm, tn), lambda i, j: (i, j)),
        )
        kernel = _fc_relu_kernel_single_k
        dim_sem = ("parallel", "parallel")
    else:
        grid_spec = pltpu.PrefetchScalarGridSpec(
            num_scalar_prefetch=0,
            grid=(grid_m, grid_n, grid_k),
            in_specs=[
                pl.BlockSpec((tm, tk), lambda i, j, k: (i, k)),     # x tile
                # Weight is the streaming operand: deeper buffering hides HBM
                # latency bubbles at k-step boundaries.
                pl.BlockSpec((tk, tn), lambda i, j, k: (k, j),
                             pipeline_mode=pl.Buffered(3)),          # W^T tile
                pl.BlockSpec((1, tn), lambda i, j, k: (0, j)),        # bias
            ],
            out_specs=pl.BlockSpec((tm, tn), lambda i, j, k: (i, j)),
            scratch_shapes=[pltpu.VMEM((tm, tn), jnp.float32)],
        )
        kernel = _fc_relu_kernel_multi_k
        dim_sem = ("parallel", "parallel", "arbitrary")

    out_p = pl.pallas_call(
        kernel,
        out_shape=jax.ShapeDtypeStruct((Mp, Np), out_dtype),
        grid_spec=grid_spec,
        compiler_params=pltpu.CompilerParams(dimension_semantics=dim_sem),
    )(xp, wtp, bp)

    return out_p[:M, :N].reshape(*orig_shape[:-1], N)


def _reference(x, weight, bias, compute_dtype=jnp.bfloat16):
    """Same math (bf16 operands, f32 accumulate) in plain JAX."""
    y = jnp.dot(x.astype(compute_dtype), weight.T.astype(compute_dtype),
                preferred_element_type=jnp.float32)
    return jnp.maximum(y + bias.astype(jnp.float32), 0.0).astype(x.dtype)


# TODO(synk): only the module defaults (norm='none', activ='relu') are
# implemented; other norm/activ variants (layer/batch/instance/spectral,
# lrelu/prelu/selu/tanh) are not translated here.


if __name__ == "__main__":
    key = jax.random.PRNGKey(0)
    kx, kw, kb, k2x, k2w, k2b = jax.random.split(key, 6)

    # --- shapes consistent with the module: batch=8, input_ch=32, output_ch=64
    B, IN_CH, OUT_CH = 8, 32, 64
    bound = 1.0 / jnp.sqrt(jnp.float32(IN_CH))
    W = jax.random.uniform(kw, (OUT_CH, IN_CH), jnp.float32, -bound, bound)
    b = jax.random.uniform(kb, (OUT_CH,), jnp.float32, -bound, bound)
    x = jax.random.normal(kx, (B, IN_CH), jnp.float32)

    out = jax.block_until_ready(fully_connected_block(x, W, b))
    assert out.shape == (B, OUT_CH)
    ref = _reference(x, W, b)
    assert jnp.allclose(out, ref, atol=1e-4, rtol=1e-4)
    # Sanity vs. full-f32 math (loose tolerance: bf16 operand quantization).
    ref32 = jnp.maximum(x @ W.T + b, 0.0)
    assert jnp.allclose(out, ref32, atol=5e-2, rtol=5e-2)

    # --- larger K exercises the multi-K-block (reduction) path + padding
    M2, K2, N2 = 16, 1024, 192
    bound2 = 1.0 / jnp.sqrt(jnp.float32(K2))
    W2 = jax.random.uniform(k2w, (N2, K2), jnp.float32, -bound2, bound2)
    b2 = jax.random.uniform(k2b, (N2,), jnp.float32, -bound2, bound2)
    x2 = jax.random.normal(k2x, (M2, K2), jnp.float32)
    out2 = jax.block_until_ready(fully_connected_block(x2, W2, b2))
    assert out2.shape == (M2, N2)
    ref2 = _reference(x2, W2, b2)
    assert jnp.allclose(out2, ref2, atol=1e-3, rtol=1e-3)

    print("KERNEL_OK")
</pallas_src>

<mosaic_0001>
module attributes {stable_mosaic.version = 11 : i64} {
  func.func @_fc_relu_kernel_single_k(%arg0: i32, %arg1: i32, %arg2: memref<8x128xbf16, #tpu.memory_space<vmem>>, %arg3: memref<128x128xbf16, #tpu.memory_space<vmem>>, %arg4: memref<1x128xf32, #tpu.memory_space<vmem>>, %arg5: memref<8x128xf32, #tpu.memory_space<vmem>>) attributes {dimension_semantics = [#tpu.dimension_semantics<parallel>, #tpu.dimension_semantics<parallel>], iteration_bounds = array<i64: 1, 1>, scalar_prefetch = 0 : i64, scratch_operands = 0 : i64, tpu.core_type = #tpu.core_type<tc>, window_params = [{transform_indices = @transform_0, window_bounds = array<i64: 8, 128>}, {transform_indices = @transform_1, window_bounds = array<i64: 128, 128>}, {transform_indices = @transform_2, window_bounds = array<i64: 1, 128>}, {transform_indices = @transform_3, window_bounds = array<i64: 8, 128>}]} {
    %c0 = arith.constant 0 : index
    %c0_0 = arith.constant 0 : index
    %0 = vector.load %arg2[%c0, %c0_0] : memref<8x128xbf16, #tpu.memory_space<vmem>>, vector<8x128xbf16>
    %c0_1 = arith.constant 0 : index
    %c0_2 = arith.constant 0 : index
    %1 = vector.load %arg3[%c0_1, %c0_2] : memref<128x128xbf16, #tpu.memory_space<vmem>>, vector<128x128xbf16>
    %cst = arith.constant dense<0.000000e+00> : vector<8x128xf32>
    %2 = tpu.matmul %0, %1, %cst {dimension_numbers = #tpu.dot_dimension_numbers<[1], [0], [0], [1], [0, 0, 1, 1], [], []>} : vector<8x128xbf16>, vector<128x128xbf16>, vector<8x128xf32> -> vector<8x128xf32>
    %c0_3 = arith.constant 0 : index
    %c0_4 = arith.constant 0 : index
    %3 = vector.load %arg4[%c0_3, %c0_4] : memref<1x128xf32, #tpu.memory_space<vmem>>, vector<1x128xf32>
    %4 = vector.broadcast %3 : vector<1x128xf32> to vector<8x128xf32>
    %5 = arith.addf %2, %4 : vector<8x128xf32>
    %cst_5 = arith.constant 0.000000e+00 : f32
    %6 = vector.broadcast %cst_5 : f32 to vector<8x128xf32>
    %7 = arith.maximumf %5, %6 : vector<8x128xf32>
    %c0_6 = arith.constant 0 : index
    %c0_7 = arith.constant 0 : index
    %8 = vector.load %arg5[%c0_6, %c0_7] : memref<8x128xf32, #tpu.memory_space<vmem>>, vector<8x128xf32>
    tpu.vector_store %arg5[%c0_6, %c0_7], %7 {strides = array<i32>} : memref<8x128xf32, #tpu.memory_space<vmem>>, vector<8x128xf32>,
    return
  }
  func.func @transform_0(%arg0: i32, %arg1: i32) -> (i32, i32) {
    %c0_i32 = arith.constant 0 : i32
    %c0_i32_0 = arith.constant 0 : i32
    return %arg0, %c0_i32 : i32, i32
  }
  func.func @transform_1(%arg0: i32, %arg1: i32) -> (i32, i32) {
    %c0_i32 = arith.constant 0 : i32
    %c0_i32_0 = arith.constant 0 : i32
    return %c0_i32, %arg1 : i32, i32
  }
  func.func @transform_2(%arg0: i32, %arg1: i32) -> (i32, i32) {
    %c0_i32 = arith.constant 0 : i32
    %c0_i32_0 = arith.constant 0 : i32
    return %c0_i32, %arg1 : i32, i32
  }
  func.func @transform_3(%arg0: i32, %arg1: i32) -> (i32, i32) {
    %c0_i32 = arith.constant 0 : i32
    return %arg0, %arg1 : i32, i32
  }
}

</mosaic_0001>

<bundles_post_ra>
// kernel: fully_connected_block.1
= control target key start
LH: loop header
LB: loop body
LE: loop exit
PB: predicated region body
PF: predicated region fallthrough
CT: control target
= control target key end

     0   :  { %v217_v1 = vmov 0.0   ;;  %vm218_vm0 = vmmov 0   ;;  %s282_s0 = inlined_call_operand.vmem [shape: bf16[8,128], index: 0, kind: input, shape index: {}]   ;;  %s283_s1 = inlined_call_operand.vmem [shape: bf16[128,128], index: 1, kind: input, shape index: {}]   ;;  %s284_s2 = inlined_call_operand.vmem [shape: f32[1,128], index: 2, kind: input, shape index: {}]   ;;  %s285_s3 = inlined_call_operand.hbm [shape: f32[8,128], index: 3, kind: output, shape index: {}]  }
   0x1   :  { %v185_v0 = vld [vmem:[%s283_s1] sm:$0xff]   ;;  %162 = vmatprep.subr.bf16.mxu0 %v217_v1  ;;  %v186_v2 = vld [vmem:[%s283_s1 + $0x8] sm:$0xff]   ;;  %178 = vmatprep.mubr.msk.bf16.mxu0 %vm218_vm0, %v217_v1  ;;  %v187_v3 = vld [vmem:[%s283_s1 + $0x10] sm:$0xff]  }
   0x2   :  { %163 = vmatpush3.bf16.msra.mxu0 %v185_v0 }
   0x3   :  { %164 = vmatprep.subr.bf16.mxu0 %v217_v1 }
   0x6   :  { %165 = vmatpush3.bf16.msra.mxu0 %v186_v2 }
   0x7   :  { %166 = vmatprep.subr.bf16.mxu0 %v217_v1 }
   0x8   :  { %8 = vsyncpa [#allocation3], 0  ;;  %v188_v4 = vld [vmem:[%s283_s1 + $0x18] sm:$0xff]   ;;  %v189_v5 = vld [vmem:[%s283_s1 + $0x20] sm:$0xff]   ;;  %s219_s5 = smov [#allocation2]  }
   0x9   :  { %v190_v6 = vld [vmem:[%s283_s1 + $0x28] sm:$0xff]   ;;  %v191_v7 = vld [vmem:[%s283_s1 + $0x30] sm:$0xff]   ;;  %v192_v8 = vld [vmem:[%s283_s1 + $0x38] sm:$0xff]   ;;  %s136_s6 = sshll.u32 %s219_s5, 4  ;;  %s137_s6 = int_to_ptr.vmem [resolvable:$true] %s136_s6 }
   0xa   :  { %167 = vmatpush3.bf16.msra.mxu0 %v187_v3  ;;  %v16_v9 = vld [vmem:[%s282_s0] sm:$0xf]  ;;  %s193_s1 = scalar_lea.vmem %s137_s6, 128  ;;  %p198_p1 = scmp.lt.s32.totalorder %s137_s6, %s137_s6 }
   0xb   :  { %168 = vmatprep.subr.bf16.mxu0 %v217_v1  ;;  %v144_v10 = vld [vmem:[%s284_s2] ss:$0 sm:$0xff]  ;;  %p194_p0 = scmp.ne.s32.totalorder %s137_s6, %s193_s1  ;;  %p199_p2 = scmp.lt.s32.totalorder %s193_s1, %s193_s1 }
   0xd   :  { %p200_p3 = por %p199_p2, %p198_p1 }
   0xe   :  { %169 = vmatpush3.bf16.msra.mxu0 %v188_v4 }
   0xf   :  { %170 = vmatprep.subr.bf16.mxu0 %v217_v1  ;;  %p201_p4 = pnand %p200_p3, %p194_p0 }
  0x12   :  { %171 = vmatpush3.bf16.msra.mxu0 %v189_v5 }
  0x13   :  { %172 = vmatprep.subr.bf16.mxu0 %v217_v1 }
  0x16   :  { %173 = vmatpush3.bf16.msra.mxu0 %v190_v6 }
  0x17   :  { %174 = vmatprep.subr.bf16.mxu0 %v217_v1 }
  0x1a   :  { %175 = vmatpush3.bf16.msra.mxu0 %v191_v7 }
  0x1b   :  { %176 = vmatprep.subr.bf16.mxu0 %v217_v1 }
  0x1e   :  { %177 = vmatpush3.bf16.msra.mxu0 %v192_v8 }
  0x21   :  { %179 = vmatmul.mubr.bf16.vlgmr.msra.gmra.mrb[0].mxu0 %v16_v9 }
  0xf4   :  { %v122_v11 = vpop.f32.mrb[0].mxu0 }
  0xf5   :  { %v123_v12 = vadd.f32 %v144_v10, %v122_v11  ;;  %v180_v13 = vpop.f32.mrb[1].mxu0 }
  0xf6   :  { %v125_v14 = vpop.f32.mrb[2].mxu0 }
  0xf7   :  { %v128_v15 = vmax.f32 %v123_v12, 0.0  ;;  %v181_v16 = vpop.f32.mrb[3].mxu0 }
  0xf9   :  { %129 = vst [vmem:[#allocation2] sm:$0xff] %v128_v15 }
  0xfa   :  { %204 = shalt.err (!%p201_p4)
}
  0xfb   :  { %s205_s2 = scalar_lea.hbm %s285_s3, 128 }
  0xfc   :  { %p206_p5 = scmp.ne.s32.totalorder %s285_s3, %s205_s2  ;;  %p209_p6 = scmp.lt.u32.totalorder %s205_s2, %s285_s3 }
  0xfe   :  { %p211_p7 = pnand %p209_p6, %p206_p5 }
 0x100   :  { %214 = shalt.err (!%p211_p7)
}
 0x101   :  { %139 = dma.vmem_to_hbm [thread:$0]  %s137_s6, 128, %s285_s3, [#allocation3]  }
 0x102   :  { %215 = dma.done.wait [#allocation3], 128  }
 0x103   :  { %216 = vsyncadd [#allocation3], 4294967168 }
 0x104   :  { %143 = vsyncpa [#allocation3], 1 }

</bundles_post_ra>
